<compile_context>
chip_gen: v6e
topology: v6e:2x2x1
jax: 0.10.0
libtpu: 0.0.40
codegen_flags: <defaults>
</compile_context>

<pallas_src>
import math

import numpy as np
import jax
import jax.numpy as jnp
from jax import lax
from jax.experimental import pallas as pl
from jax.experimental.pallas import tpu as pltpu

_GN_EPS = 1e-5
_GROUPS = 8


# ----------------------------------------------------------------------------
# Fused GroupNorm + SiLU + Conv2d(3x3, pad=1) kernel (one batch element / step)
# ----------------------------------------------------------------------------
def _make_block_kernel(cin, cout, h, w, groups):
    cs = cin // groups
    hw = h * w
    pad = w + 1                       # leading zeros in the flat padded scratch
    inv_n = 1.0 / float(cs * hw)

    def kernel(x_ref, g_ref, b_ref, w_ref, bias_ref, ml_ref, mr_ref,
               o_ref, act_ref):
        # x_ref: (1, Cin, HW) f32      g_ref/b_ref: (Cin, 1) f32
        # w_ref: (9, Cout, Cin) bf16   bias_ref: (Cout, 1) f32
        # ml_ref/mr_ref: (1, HW) f32 column-wrap masks
        # o_ref: (1, Cout, HW) f32     act_ref: (Cin, HW + 2W + 2) bf16 scratch

        # ---- GroupNorm stats: single pass over the lane-dense (Cin, HW) tile
        x = x_ref[0]                                          # (Cin, HW)
        ch_s = jnp.sum(x, axis=1, keepdims=True)              # (Cin, 1)
        ch_q = jnp.sum(x * x, axis=1, keepdims=True)          # (Cin, 1)
        g_s = jnp.sum(ch_s.reshape(groups, cs, 1), axis=1, keepdims=True)
        g_q = jnp.sum(ch_q.reshape(groups, cs, 1), axis=1, keepdims=True)
        mean_g = g_s * inv_n                                   # (groups,1,1)
        var_g = g_q * inv_n - mean_g * mean_g                  # E[x^2]-mean^2
        inv_g = lax.rsqrt(var_g + _GN_EPS)
        mean_c = jnp.broadcast_to(mean_g, (groups, cs, 1)).reshape(cin, 1)
        inv_c = jnp.broadcast_to(inv_g, (groups, cs, 1)).reshape(cin, 1)

        # ---- affine + SiLU (f32 VPU/EUP) ------------------------------------
        y = (x - mean_c) * (inv_c * g_ref[...]) + b_ref[...]
        y = y * jax.nn.sigmoid(y)

        # ---- stash activation (bf16) in a flat zero-padded VMEM scratch -----
        act_ref[...] = jnp.zeros_like(act_ref)
        act_ref[:, pl.ds(pad, hw)] = y.astype(act_ref.dtype)

        # ---- 3x3 conv: nine shifted (Cout,Cin)@(Cin,HW) bf16 MXU matmuls ----
        # tap (ky,kx) reads act at flat offset (ky-1)*W + (kx-1); the row-edge
        # (ky) cases are covered by the scratch's zero borders, the column
        # wrap-around (kx) cases are zeroed on the (Cout,HW) partial results.
        acc = jnp.zeros((cout, hw), jnp.float32)
        for kx in range(3):
            part = jnp.zeros((cout, hw), jnp.float32)
            for ky in range(3):
                k = ky * 3 + kx
                shift = (ky - 1) * w + (kx - 1)
                win = act_ref[:, pl.ds(pad + shift, hw)]       # (Cin, HW) bf16
                part = part + jnp.dot(w_ref[k], win,
                                      preferred_element_type=jnp.float32)
            if kx == 0:
                part = part * ml_ref[...]     # taps reading column w-1
            elif kx == 2:
                part = part * mr_ref[...]     # taps reading column w+1
            acc = acc + part

        o_ref[0] = acc + bias_ref[...]

    return kernel


def fused_block(x, gamma, beta, weight, bias, groups=_GROUPS):
    """x: (B, Cin, H, W) -> GroupNorm(groups) -> SiLU -> Conv3x3 -> (B, Cout, H, W)."""
    b, cin, h, w = x.shape
    cout = weight.shape[0]
    hw = h * w
    assert cin % groups == 0

    x_flat = x.reshape(b, cin, hw).astype(jnp.float32)
    g_col = gamma.reshape(cin, 1).astype(jnp.float32)
    b_col = beta.reshape(cin, 1).astype(jnp.float32)
    # per-tap weights, bf16 for the MXU (accumulation stays f32 in-kernel)
    w_taps = jnp.transpose(weight, (2, 3, 0, 1)).reshape(9, cout, cin)
    w_taps = w_taps.astype(jnp.bfloat16)
    bias_col = bias.reshape(cout, 1).astype(jnp.float32)
    # column-wrap masks for the flat im2col windows (host-built constants)
    col = np.arange(hw) % w
    ml = jnp.asarray((col != 0).astype(np.float32).reshape(1, hw))
    mr = jnp.asarray((col != w - 1).astype(np.float32).reshape(1, hw))

    kernel = _make_block_kernel(cin, cout, h, w, groups)
    out = pl.pallas_call(
        kernel,
        out_shape=jax.ShapeDtypeStruct((b, cout, hw), jnp.float32),
        grid=(b,),
        in_specs=[
            pl.BlockSpec((1, cin, hw), lambda i: (i, 0, 0)),
            pl.BlockSpec((cin, 1), lambda i: (0, 0)),
            pl.BlockSpec((cin, 1), lambda i: (0, 0)),
            pl.BlockSpec((9, cout, cin), lambda i: (0, 0, 0)),
            pl.BlockSpec((cout, 1), lambda i: (0, 0)),
            pl.BlockSpec((1, hw), lambda i: (0, 0)),
            pl.BlockSpec((1, hw), lambda i: (0, 0)),
        ],
        out_specs=pl.BlockSpec((1, cout, hw), lambda i: (i, 0, 0)),
        scratch_shapes=[pltpu.VMEM((cin, hw + 2 * w + 2), jnp.bfloat16)],
        compiler_params=pltpu.CompilerParams(
            dimension_semantics=("parallel",)),
    )(x_flat, g_col, b_col, w_taps, bias_col, ml, mr)
    return out.reshape(b, cout, h, w)


# ----------------------------------------------------------------------------
# UpsampleCombiner forward
# ----------------------------------------------------------------------------
def _nearest_resize(img, target):
    """F.interpolate(img, target, mode='nearest') equivalent."""
    if img.shape[-1] == target:            # matches resize_image_to's early-out
        return img
    b, c, hin, win = img.shape
    if target % hin == 0 and target % win == 0:
        rh, rw = target // hin, target // win
        out = jnp.broadcast_to(img[:, :, :, None, :, None],
                               (b, c, hin, rh, win, rw))
        return out.reshape(b, c, target, target)
    hi = (jnp.arange(target) * hin) // target
    wi = (jnp.arange(target) * win) // target
    return img[:, :, hi[:, None], wi[None, :]]


def upsample_combiner_forward(x, fmaps=None, params=(), enabled=True):
    """x: (B, dim, H, W); fmaps: list of (B, Cin_i, Hi, Wi); params: per-fmap dict."""
    target = x.shape[-1]
    fmaps = fmaps if fmaps is not None else ()
    if (not enabled) or len(fmaps) == 0 or len(params) == 0:
        return x
    outs = []
    for fmap, p in zip(fmaps, params):
        fmap = _nearest_resize(fmap, target)
        outs.append(fused_block(fmap, p["gn_gamma"], p["gn_beta"],
                                p["conv_w"], p["conv_b"]))
    # Final channel concat stays in the wrapper (never inside a kernel).
    return jnp.concatenate([x] + outs, axis=1)


# ----------------------------------------------------------------------------
# Pure-JAX reference (conv_dtype=bf16 mirrors what the MXU sees in-kernel)
# ----------------------------------------------------------------------------
def _reference(x, fmaps, params, conv_dtype=jnp.float32):
    target = x.shape[-1]
    outs = []
    for fmap, p in zip(fmaps, params):
        fmap = _nearest_resize(fmap, target).astype(jnp.float32)
        b, c, h, w = fmap.shape
        cs = c // _GROUPS
        xr = fmap.reshape(b, _GROUPS, cs, h, w)
        mean = xr.mean(axis=(2, 3, 4), keepdims=True)
        var = ((xr - mean) ** 2).mean(axis=(2, 3, 4), keepdims=True)
        xn = ((xr - mean) / jnp.sqrt(var + _GN_EPS)).reshape(b, c, h, w)
        y = xn * p["gn_gamma"].reshape(1, c, 1, 1) + p["gn_beta"].reshape(1, c, 1, 1)
        y = y * jax.nn.sigmoid(y)
        y = y.astype(conv_dtype).astype(jnp.float32)
        wq = p["conv_w"].astype(conv_dtype).astype(jnp.float32)
        out = lax.conv_general_dilated(
            y, wq, window_strides=(1, 1), padding=((1, 1), (1, 1)),
            dimension_numbers=("NCHW", "OIHW", "NCHW"),
            precision=lax.Precision.HIGHEST)
        outs.append(out + p["conv_b"].reshape(1, -1, 1, 1))
    return jnp.concatenate([x] + outs, axis=1)


if __name__ == "__main__":
    key = jax.random.PRNGKey(0)
    keys = jax.random.split(key, 12)

    B, dim, H = 2, 8, 16
    dim_ins = (8, 16)          # must be divisible by GroupNorm groups (8)
    dim_outs = (8, 8)
    fmap_sizes = (8, 16)       # first fmap exercises the nearest upsample 8 -> 16

    x = jax.random.normal(keys[0], (B, dim, H, H), dtype=jnp.float32)

    fmaps, params = [], []
    ki = 1
    for cin, cout, s in zip(dim_ins, dim_outs, fmap_sizes):
        fmaps.append(jax.random.normal(keys[ki], (B, cin, s, s), dtype=jnp.float32))
        params.append(dict(
            gn_gamma=1.0 + 0.2 * jax.random.normal(keys[ki + 1], (cin,), dtype=jnp.float32),
            gn_beta=0.1 * jax.random.normal(keys[ki + 2], (cin,), dtype=jnp.float32),
            conv_w=jax.random.normal(keys[ki + 3], (cout, cin, 3, 3), dtype=jnp.float32)
                   / math.sqrt(9.0 * cin),
            conv_b=0.1 * jax.random.normal(keys[ki + 4], (cout,), dtype=jnp.float32),
        ))
        ki += 5

    # Disabled / no-fmaps path returns x untouched (no kernels launched).
    assert upsample_combiner_forward(x, None, params, enabled=False) is x

    out = jax.block_until_ready(upsample_combiner_forward(x, fmaps, params, enabled=True))
    assert out.shape == (B, dim + sum(dim_outs), H, H), out.shape

    # Tight check against a reference whose conv operands are bf16-quantized
    # (exactly what the in-kernel MXU sees; only accumulation order differs).
    ref_q = _reference(x, fmaps, params, conv_dtype=jnp.bfloat16)
    err_q = float(jnp.max(jnp.abs(out - ref_q)))
    assert jnp.allclose(out, ref_q, atol=5e-3, rtol=5e-3), err_q

    # Loose check against the full-f32 reference (bf16 MXU operands cost a few 1e-3).
    ref_f = _reference(x, fmaps, params, conv_dtype=jnp.float32)
    err_f = float(jnp.max(jnp.abs(out - ref_f)))
    assert jnp.allclose(out, ref_f, atol=3e-2, rtol=3e-2), err_f

    print("KERNEL_OK")
</pallas_src>

<mosaic_0001>
module attributes {stable_mosaic.version = 11 : i64} {
  func.func @kernel(%arg0: i32, %arg1: memref<1x8x256xf32, #tpu.memory_space<vmem>>, %arg2: memref<8x1xf32, #tpu.memory_space<vmem>>, %arg3: memref<8x1xf32, #tpu.memory_space<vmem>>, %arg4: memref<9x8x8xbf16, #tpu.memory_space<vmem>>, %arg5: memref<8x1xf32, #tpu.memory_space<vmem>>, %arg6: memref<1x256xf32, #tpu.memory_space<vmem>>, %arg7: memref<1x256xf32, #tpu.memory_space<vmem>>, %arg8: memref<1x8x256xf32, #tpu.memory_space<vmem>>, %arg9: memref<8x290xbf16, #tpu.memory_space<vmem>>) attributes {dimension_semantics = [#tpu.dimension_semantics<parallel>], iteration_bounds = array<i64: 2>, scalar_prefetch = 0 : i64, scratch_operands = 1 : i64, tpu.core_type = #tpu.core_type<tc>, window_params = [{transform_indices = @transform_0, window_bounds = array<i64: 1, 8, 256>}, {pipeline_mode = #tpu.pipeline_mode<synchronous>, transform_indices = @transform_1, window_bounds = array<i64: 8, 1>}, {pipeline_mode = #tpu.pipeline_mode<synchronous>, transform_indices = @transform_2, window_bounds = array<i64: 8, 1>}, {pipeline_mode = #tpu.pipeline_mode<synchronous>, transform_indices = @transform_3, window_bounds = array<i64: 9, 8, 8>}, {pipeline_mode = #tpu.pipeline_mode<synchronous>, transform_indices = @transform_4, window_bounds = array<i64: 8, 1>}, {pipeline_mode = #tpu.pipeline_mode<synchronous>, transform_indices = @transform_5, window_bounds = array<i64: 1, 256>}, {pipeline_mode = #tpu.pipeline_mode<synchronous>, transform_indices = @transform_6, window_bounds = array<i64: 1, 256>}, {transform_indices = @transform_7, window_bounds = array<i64: 1, 8, 256>}]} {
    %c0 = arith.constant 0 : index
    %c0_0 = arith.constant 0 : index
    %c0_1 = arith.constant 0 : index
    %0 = vector.load %arg1[%c0, %c0_0, %c0_1] : memref<1x8x256xf32, #tpu.memory_space<vmem>>, vector<1x8x256xf32>
    %1 = vector.shape_cast %0 : vector<1x8x256xf32> to vector<8x256xf32>
    %cst = arith.constant dense<0.000000e+00> : vector<8xf32>
    %2 = vector.multi_reduction <add>, %1, %cst [1] : vector<8x256xf32> to vector<8xf32>
    %3 = vector.shape_cast %2 : vector<8xf32> to vector<8x1xf32>
    %4 = arith.mulf %1, %1 : vector<8x256xf32>
    %cst_2 = arith.constant dense<0.000000e+00> : vector<8xf32>
    %5 = vector.multi_reduction <add>, %4, %cst_2 [1] : vector<8x256xf32> to vector<8xf32>
    %6 = vector.shape_cast %5 : vector<8xf32> to vector<8x1xf32>
    %7 = vector.shape_cast %3 : vector<8x1xf32> to vector<8x1x1xf32>
    %cst_3 = arith.constant dense<0.000000e+00> : vector<8x1xf32>
    %8 = vector.multi_reduction <add>, %7, %cst_3 [1] : vector<8x1x1xf32> to vector<8x1xf32>
    %9 = vector.shape_cast %8 : vector<8x1xf32> to vector<8x1x1xf32>
    %10 = vector.shape_cast %6 : vector<8x1xf32> to vector<8x1x1xf32>
    %cst_4 = arith.constant dense<0.000000e+00> : vector<8x1xf32>
    %11 = vector.multi_reduction <add>, %10, %cst_4 [1] : vector<8x1x1xf32> to vector<8x1xf32>
    %12 = vector.shape_cast %11 : vector<8x1xf32> to vector<8x1x1xf32>
    %cst_5 = arith.constant 3.906250e-03 : f32
    %13 = vector.broadcast %cst_5 : f32 to vector<8x1x1xf32>
    %14 = arith.mulf %9, %13 : vector<8x1x1xf32>
    %cst_6 = arith.constant 3.906250e-03 : f32
    %15 = vector.broadcast %cst_6 : f32 to vector<8x1x1xf32>
    %16 = arith.mulf %12, %15 : vector<8x1x1xf32>
    %17 = arith.mulf %14, %14 : vector<8x1x1xf32>
    %18 = arith.subf %16, %17 : vector<8x1x1xf32>
    %cst_7 = arith.constant 9.99999974E-6 : f32
    %19 = vector.broadcast %cst_7 : f32 to vector<8x1x1xf32>
    %20 = arith.addf %18, %19 : vector<8x1x1xf32>
    %21 = math.rsqrt %20 : vector<8x1x1xf32>
    %22 = vector.shape_cast %14 : vector<8x1x1xf32> to vector<8x1xf32>
    %23 = vector.shape_cast %21 : vector<8x1x1xf32> to vector<8x1xf32>
    %24 = vector.broadcast %22 : vector<8x1xf32> to vector<8x256xf32>
    %25 = arith.subf %1, %24 : vector<8x256xf32>
    %c0_8 = arith.constant 0 : index
    %c0_9 = arith.constant 0 : index
    %26 = vector.load %arg2[%c0_8, %c0_9] : memref<8x1xf32, #tpu.memory_space<vmem>>, vector<8x1xf32>
    %27 = arith.mulf %23, %26 : vector<8x1xf32>
    %28 = vector.broadcast %27 : vector<8x1xf32> to vector<8x256xf32>
    %29 = arith.mulf %25, %28 : vector<8x256xf32>
    %c0_10 = arith.constant 0 : index
    %c0_11 = arith.constant 0 : index
    %30 = vector.load %arg3[%c0_10, %c0_11] : memref<8x1xf32, #tpu.memory_space<vmem>>, vector<8x1xf32>
    %31 = vector.broadcast %30 : vector<8x1xf32> to vector<8x256xf32>
    %32 = arith.addf %29, %31 : vector<8x256xf32>
    %33 = arith.negf %32 : vector<8x256xf32>
    %34 = math.exp %33 : vector<8x256xf32>
    %cst_12 = arith.constant 1.000000e+00 : f32
    %35 = vector.broadcast %cst_12 : f32 to vector<8x256xf32>
    %36 = arith.addf %35, %34 : vector<8x256xf32>
    %37 = arith.divf %35, %36 : vector<8x256xf32>
    %38 = arith.mulf %32, %37 : vector<8x256xf32>
    %cst_13 = arith.constant 0.000000e+00 : bf16
    %39 = vector.broadcast %cst_13 : bf16 to vector<8x290xbf16>
    %c0_14 = arith.constant 0 : index
    %c0_15 = arith.constant 0 : index
    %40 = vector.load %arg9[%c0_14, %c0_15] : memref<8x290xbf16, #tpu.memory_space<vmem>>, vector<8x290xbf16>
    tpu.vector_store %arg9[%c0_14, %c0_15], %39 {strides = array<i32>} : memref<8x290xbf16, #tpu.memory_space<vmem>>, vector<8x290xbf16>,
    %41 = arith.truncf %38 : vector<8x256xf32> to vector<8x256xbf16>
    %c0_16 = arith.constant 0 : index
    %c17 = arith.constant 17 : index
    %42 = vector.load %arg9[%c0_16, %c17] : memref<8x290xbf16, #tpu.memory_space<vmem>>, vector<8x256xbf16>
    tpu.vector_store %arg9[%c0_16, %c17], %41 {strides = array<i32>} : memref<8x290xbf16, #tpu.memory_space<vmem>>, vector<8x256xbf16>,
    %cst_17 = arith.constant 0.000000e+00 : f32
    %43 = vector.broadcast %cst_17 : f32 to vector<8x256xf32>
    %cst_18 = arith.constant 0.000000e+00 : f32
    %44 = vector.broadcast %cst_18 : f32 to vector<8x256xf32>
    %c0_19 = arith.constant 0 : index
    %c0_20 = arith.constant 0 : index
    %45 = vector.load %arg9[%c0_19, %c0_20] : memref<8x290xbf16, #tpu.memory_space<vmem>>, vector<8x256xbf16>
    %c0_21 = arith.constant 0 : index
    %c0_22 = arith.constant 0 : index
    %c0_23 = arith.constant 0 : index
    %46 = vector.load %arg4[%c0_21, %c0_22, %c0_23] : memref<9x8x8xbf16, #tpu.memory_space<vmem>>, vector<1x8x8xbf16>
    %47 = vector.shape_cast %46 : vector<1x8x8xbf16> to vector<8x8xbf16>
    %cst_24 = arith.constant dense<0.000000e+00> : vector<8x256xf32>
    %48 = tpu.matmul %47, %45, %cst_24 {dimension_numbers = #tpu.dot_dimension_numbers<[1], [0], [0], [1], [0, 0, 1, 1], [], []>} : vector<8x8xbf16>, vector<8x256xbf16>, vector<8x256xf32> -> vector<8x256xf32>
    %49 = arith.addf %44, %48 : vector<8x256xf32>
    %c0_25 = arith.constant 0 : index
    %c16 = arith.constant 16 : index
    %50 = vector.load %arg9[%c0_25, %c16] : memref<8x290xbf16, #tpu.memory_space<vmem>>, vector<8x256xbf16>
    %c3 = arith.constant 3 : index
    %c0_26 = arith.constant 0 : index
    %c0_27 = arith.constant 0 : index
    %51 = vector.load %arg4[%c3, %c0_26, %c0_27] : memref<9x8x8xbf16, #tpu.memory_space<vmem>>, vector<1x8x8xbf16>
    %52 = vector.shape_cast %51 : vector<1x8x8xbf16> to vector<8x8xbf16>
    %cst_28 = arith.constant dense<0.000000e+00> : vector<8x256xf32>
    %53 = tpu.matmul %52, %50, %cst_28 {dimension_numbers = #tpu.dot_dimension_numbers<[1], [0], [0], [1], [0, 0, 1, 1], [], []>} : vector<8x8xbf16>, vector<8x256xbf16>, vector<8x256xf32> -> vector<8x256xf32>
    %54 = arith.addf %49, %53 : vector<8x256xf32>
    %c0_29 = arith.constant 0 : index
    %c32 = arith.constant 32 : index
    %55 = vector.load %arg9[%c0_29, %c32] : memref<8x290xbf16, #tpu.memory_space<vmem>>, vector<8x256xbf16>
    %c6 = arith.constant 6 : index
    %c0_30 = arith.constant 0 : index
    %c0_31 = arith.constant 0 : index
    %56 = vector.load %arg4[%c6, %c0_30, %c0_31] : memref<9x8x8xbf16, #tpu.memory_space<vmem>>, vector<1x8x8xbf16>
    %57 = vector.shape_cast %56 : vector<1x8x8xbf16> to vector<8x8xbf16>
    %cst_32 = arith.constant dense<0.000000e+00> : vector<8x256xf32>
    %58 = tpu.matmul %57, %55, %cst_32 {dimension_numbers = #tpu.dot_dimension_numbers<[1], [0], [0], [1], [0, 0, 1, 1], [], []>} : vector<8x8xbf16>, vector<8x256xbf16>, vector<8x256xf32> -> vector<8x256xf32>
    %59 = arith.addf %54, %58 : vector<8x256xf32>
    %c0_33 = arith.constant 0 : index
    %c0_34 = arith.constant 0 : index
    %60 = vector.load %arg6[%c0_33, %c0_34] : memref<1x256xf32, #tpu.memory_space<vmem>>, vector<1x256xf32>
    %61 = vector.broadcast %60 : vector<1x256xf32> to vector<8x256xf32>
    %62 = arith.mulf %59, %61 : vector<8x256xf32>
    %63 = arith.addf %43, %62 : vector<8x256xf32>
    %cst_35 = arith.constant 0.000000e+00 : f32
    %64 = vector.broadcast %cst_35 : f32 to vector<8x256xf32>
    %c0_36 = arith.constant 0 : index
    %c1 = arith.constant 1 : index
    %65 = vector.load %arg9[%c0_36, %c1] : memref<8x290xbf16, #tpu.memory_space<vmem>>, vector<8x256xbf16>
    %c1_37 = arith.constant 1 : index
    %c0_38 = arith.constant 0 : index
    %c0_39 = arith.constant 0 : index
    %66 = vector.load %arg4[%c1_37, %c0_38, %c0_39] : memref<9x8x8xbf16, #tpu.memory_space<vmem>>, vector<1x8x8xbf16>
    %67 = vector.shape_cast %66 : vector<1x8x8xbf16> to vector<8x8xbf16>
    %cst_40 = arith.constant dense<0.000000e+00> : vector<8x256xf32>
    %68 = tpu.matmul %67, %65, %cst_40 {dimension_numbers = #tpu.dot_dimension_numbers<[1], [0], [0], [1], [0, 0, 1, 1], [], []>} : vector<8x8xbf16>, vector<8x256xbf16>, vector<8x256xf32> -> vector<8x256xf32>
    %69 = arith.addf %64, %68 : vector<8x256xf32>
    %c0_41 = arith.constant 0 : index
    %c17_42 = arith.constant 17 : index
    %70 = vector.load %arg9[%c0_41, %c17_42] : memref<8x290xbf16, #tpu.memory_space<vmem>>, vector<8x256xbf16>
    %c4 = arith.constant 4 : index
    %c0_43 = arith.constant 0 : index
    %c0_44 = arith.constant 0 : index
    %71 = vector.load %arg4[%c4, %c0_43, %c0_44] : memref<9x8x8xbf16, #tpu.memory_space<vmem>>, vector<1x8x8xbf16>
    %72 = vector.shape_cast %71 : vector<1x8x8xbf16> to vector<8x8xbf16>
    %cst_45 = arith.constant dense<0.000000e+00> : vector<8x256xf32>
    %73 = tpu.matmul %72, %70, %cst_45 {dimension_numbers = #tpu.dot_dimension_numbers<[1], [0], [0], [1], [0, 0, 1, 1], [], []>} : vector<8x8xbf16>, vector<8x256xbf16>, vector<8x256xf32> -> vector<8x256xf32>
    %74 = arith.addf %69, %73 : vector<8x256xf32>
    %c0_46 = arith.constant 0 : index
    %c33 = arith.constant 33 : index
    %75 = vector.load %arg9[%c0_46, %c33] : memref<8x290xbf16, #tpu.memory_space<vmem>>, vector<8x256xbf16>
    %c7 = arith.constant 7 : index
    %c0_47 = arith.constant 0 : index
    %c0_48 = arith.constant 0 : index
    %76 = vector.load %arg4[%c7, %c0_47, %c0_48] : memref<9x8x8xbf16, #tpu.memory_space<vmem>>, vector<1x8x8xbf16>
    %77 = vector.shape_cast %76 : vector<1x8x8xbf16> to vector<8x8xbf16>
    %cst_49 = arith.constant dense<0.000000e+00> : vector<8x256xf32>
    %78 = tpu.matmul %77, %75, %cst_49 {dimension_numbers = #tpu.dot_dimension_numbers<[1], [0], [0], [1], [0, 0, 1, 1], [], []>} : vector<8x8xbf16>, vector<8x256xbf16>, vector<8x256xf32> -> vector<8x256xf32>
    %79 = arith.addf %74, %78 : vector<8x256xf32>
    %80 = arith.addf %63, %79 : vector<8x256xf32>
    %cst_50 = arith.constant 0.000000e+00 : f32
    %81 = vector.broadcast %cst_50 : f32 to vector<8x256xf32>
    %c0_51 = arith.constant 0 : index
    %c2 = arith.constant 2 : index
    %82 = vector.load %arg9[%c0_51, %c2] : memref<8x290xbf16, #tpu.memory_space<vmem>>, vector<8x256xbf16>
    %c2_52 = arith.constant 2 : index
    %c0_53 = arith.constant 0 : index
    %c0_54 = arith.constant 0 : index
    %83 = vector.load %arg4[%c2_52, %c0_53, %c0_54] : memref<9x8x8xbf16, #tpu.memory_space<vmem>>, vector<1x8x8xbf16>
    %84 = vector.shape_cast %83 : vector<1x8x8xbf16> to vector<8x8xbf16>
    %cst_55 = arith.constant dense<0.000000e+00> : vector<8x256xf32>
    %85 = tpu.matmul %84, %82, %cst_55 {dimension_numbers = #tpu.dot_dimension_numbers<[1], [0], [0], [1], [0, 0, 1, 1], [], []>} : vector<8x8xbf16>, vector<8x256xbf16>, vector<8x256xf32> -> vector<8x256xf32>
    %86 = arith.addf %81, %85 : vector<8x256xf32>
    %c0_56 = arith.constant 0 : index
    %c18 = arith.constant 18 : index
    %87 = vector.load %arg9[%c0_56, %c18] : memref<8x290xbf16, #tpu.memory_space<vmem>>, vector<8x256xbf16>
    %c5 = arith.constant 5 : index
    %c0_57 = arith.constant 0 : index
    %c0_58 = arith.constant 0 : index
    %88 = vector.load %arg4[%c5, %c0_57, %c0_58] : memref<9x8x8xbf16, #tpu.memory_space<vmem>>, vector<1x8x8xbf16>
    %89 = vector.shape_cast %88 : vector<1x8x8xbf16> to vector<8x8xbf16>
    %cst_59 = arith.constant dense<0.000000e+00> : vector<8x256xf32>
    %90 = tpu.matmul %89, %87, %cst_59 {dimension_numbers = #tpu.dot_dimension_numbers<[1], [0], [0], [1], [0, 0, 1, 1], [], []>} : vector<8x8xbf16>, vector<8x256xbf16>, vector<8x256xf32> -> vector<8x256xf32>
    %91 = arith.addf %86, %90 : vector<8x256xf32>
    %c0_60 = arith.constant 0 : index
    %c34 = arith.constant 34 : index
    %92 = vector.load %arg9[%c0_60, %c34] : memref<8x290xbf16, #tpu.memory_space<vmem>>, vector<8x256xbf16>
    %c8 = arith.constant 8 : index
    %c0_61 = arith.constant 0 : index
    %c0_62 = arith.constant 0 : index
    %93 = vector.load %arg4[%c8, %c0_61, %c0_62] : memref<9x8x8xbf16, #tpu.memory_space<vmem>>, vector<1x8x8xbf16>
    %94 = vector.shape_cast %93 : vector<1x8x8xbf16> to vector<8x8xbf16>
    %cst_63 = arith.constant dense<0.000000e+00> : vector<8x256xf32>
    %95 = tpu.matmul %94, %92, %cst_63 {dimension_numbers = #tpu.dot_dimension_numbers<[1], [0], [0], [1], [0, 0, 1, 1], [], []>} : vector<8x8xbf16>, vector<8x256xbf16>, vector<8x256xf32> -> vector<8x256xf32>
    %96 = arith.addf %91, %95 : vector<8x256xf32>
    %c0_64 = arith.constant 0 : index
    %c0_65 = arith.constant 0 : index
    %97 = vector.load %arg7[%c0_64, %c0_65] : memref<1x256xf32, #tpu.memory_space<vmem>>, vector<1x256xf32>
    %98 = vector.broadcast %97 : vector<1x256xf32> to vector<8x256xf32>
    %99 = arith.mulf %96, %98 : vector<8x256xf32>
    %100 = arith.addf %80, %99 : vector<8x256xf32>
    %c0_66 = arith.constant 0 : index
    %c0_67 = arith.constant 0 : index
    %101 = vector.load %arg5[%c0_66, %c0_67] : memref<8x1xf32, #tpu.memory_space<vmem>>, vector<8x1xf32>
    %102 = vector.broadcast %101 : vector<8x1xf32> to vector<8x256xf32>
    %103 = arith.addf %100, %102 : vector<8x256xf32>
    %c0_68 = arith.constant 0 : index
    %c0_69 = arith.constant 0 : index
    %c0_70 = arith.constant 0 : index
    %104 = vector.load %arg8[%c0_68, %c0_69, %c0_70] : memref<1x8x256xf32, #tpu.memory_space<vmem>>, vector<1x8x256xf32>
    %105 = vector.shape_cast %104 : vector<1x8x256xf32> to vector<8x256xf32>
    %106 = vector.shape_cast %103 : vector<8x256xf32> to vector<1x8x256xf32>
    tpu.vector_store %arg8[%c0_68, %c0_69, %c0_70], %106 {strides = array<i32>} : memref<1x8x256xf32, #tpu.memory_space<vmem>>, vector<1x8x256xf32>,
    return
  }
  func.func @transform_0(%arg0: i32) -> (i32, i32, i32) {
    %c0_i32 = arith.constant 0 : i32
    %c0_i32_0 = arith.constant 0 : i32
    %c0_i32_1 = arith.constant 0 : i32
    return %arg0, %c0_i32, %c0_i32_0 : i32, i32, i32
  }
  func.func @transform_1(%arg0: i32) -> (i32, i32) {
    %c0_i32 = arith.constant 0 : i32
    %c0_i32_0 = arith.constant 0 : i32
    %c0_i32_1 = arith.constant 0 : i32
    return %c0_i32, %c0_i32_0 : i32, i32
  }
  func.func @transform_2(%arg0: i32) -> (i32, i32) {
    %c0_i32 = arith.constant 0 : i32
    %c0_i32_0 = arith.constant 0 : i32
    %c0_i32_1 = arith.constant 0 : i32
    return %c0_i32, %c0_i32_0 : i32, i32
  }
  func.func @transform_3(%arg0: i32) -> (i32, i32, i32) {
    %c0_i32 = arith.constant 0 : i32
    %c0_i32_0 = arith.constant 0 : i32
    %c0_i32_1 = arith.constant 0 : i32
    %c0_i32_2 = arith.constant 0 : i32
    return %c0_i32, %c0_i32_0, %c0_i32_1 : i32, i32, i32
  }
  func.func @transform_4(%arg0: i32) -> (i32, i32) {
    %c0_i32 = arith.constant 0 : i32
    %c0_i32_0 = arith.constant 0 : i32
    %c0_i32_1 = arith.constant 0 : i32
    return %c0_i32, %c0_i32_0 : i32, i32
  }
  func.func @transform_5(%arg0: i32) -> (i32, i32) {
    %c0_i32 = arith.constant 0 : i32
    %c0_i32_0 = arith.constant 0 : i32
    %c0_i32_1 = arith.constant 0 : i32
    return %c0_i32, %c0_i32_0 : i32, i32
  }
  func.func @transform_6(%arg0: i32) -> (i32, i32) {
    %c0_i32 = arith.constant 0 : i32
    %c0_i32_0 = arith.constant 0 : i32
    %c0_i32_1 = arith.constant 0 : i32
    return %c0_i32, %c0_i32_0 : i32, i32
  }
  func.func @transform_7(%arg0: i32) -> (i32, i32, i32) {
    %c0_i32 = arith.constant 0 : i32
    %c0_i32_0 = arith.constant 0 : i32
    %c0_i32_1 = arith.constant 0 : i32
    return %arg0, %c0_i32, %c0_i32_0 : i32, i32, i32
  }
}

</mosaic_0001>

<bundles_post_ra>
// kernel: tpu_custom_call.1
= control target key start
LH: loop header
LB: loop body
LE: loop exit
PB: predicated region body
PF: predicated region fallthrough
CT: control target
= control target key end

     0   :  { %12 = vsyncpa [#allocation4], 0  ;;  %s1946_s0 = inlined_call_operand.vmem [shape: f32[2,8,256], index: 0, kind: input, shape index: {}]   ;;  %s1947_s1 = inlined_call_operand.vmem [shape: f32[8,1], index: 1, kind: input, shape index: {}]   ;;  %s1948_s2 = inlined_call_operand.vmem [shape: f32[8,1], index: 2, kind: input, shape index: {}]   ;;  %s1949_s3 = inlined_call_operand.vmem [shape: bf16[9,8,8], index: 3, kind: input, shape index: {}]   ;;  %s1950_s4 = inlined_call_operand.vmem [shape: f32[8,1], index: 4, kind: input, shape index: {}]   ;;  %s1951_s5 = inlined_call_operand.vmem [shape: f32[1,256], index: 5, kind: input, shape index: {}]   ;;  %s1952_s6 = inlined_call_operand.vmem [shape: f32[1,256], index: 6, kind: input, shape index: {}]   ;;  %s1953_s7 = inlined_call_operand.hbm [shape: f32[2,8,256], index: 7, kind: output, shape index: {}]  }
   0x1   :  { %14 = vsyncpa [#allocation4 + $0x1], 0  ;;  %s1676_s24 = smov 0   ;;  %s1678_s25 = smov 0  }
   0x2   :  { %s1680_s26 = smov 0   ;;  %s1682_s27 = smov 0  }
   0x3 LB: > { %s1697_s28 = sadd.s32 4294967295, %s1622_s27   ;;  %s1435_s29 = sadd.s32 4294967294, %s1622_s27   ;;  %s1622_s27 = sphi %s1682_s27, %s1959_s27   ;;  %s1618_s26 = sphi %s1680_s26, %s1958_s26   ;;  %s1614_s25 = sphi %s1678_s25, %s1957_s25   ;;  %s1610_s24 = sphi %s1676_s24, %s1956_s24  }
   0x4   : > { %s1701_s30 = sadd.s32 1, %s1622_s27   ;;  %s179_s8 = sadd.s32 1, %s1618_s26 }
   0x5   : > { %s176_s9 = ssub.s32 %s1622_s27, %s1701_s30  ;;  %p189_p0 = scmp.ne.s32.totalorder %s1618_s26, %s1614_s25 }
   0x6   : > { %p177_p1 = scmp.eq.s32.totalorder %s176_s9, 0  ;;  %p190_p2 = scmp.eq.s32.totalorder %s1697_s28, 1 }
   0x7   : > { %p195_p3 = scmp.ne.s32.totalorder %s1614_s25, %s1610_s24  ;;  %p196_p4 = scmp.eq.s32.totalorder %s1435_s29, 1 }
   0x8   : > { %s1712_s10 = scalar_select %p177_p1, %s1618_s26, %s179_s8  }
   0x9   : > { %p1714_p5 = por %p190_p2, %p189_p0  ;;  %p1718_p6 = por %p196_p4, %p195_p3 }
   0xa   : > { %p1438_p7 = scmp.ge.s32.totalorder %s1622_s27, 1  ;;  %p240_p8 = scmp.lt.s32.totalorder %s1622_s27, 3 }
   0xc   : > { %p241_p9 = pnand %p1438_p7, %p240_p8 }
   0xd   : > { %p272_p10 = scmp.lt.s32.totalorder (!%p241_p9), %s1697_s28, 1  ;;  %s1626_s22 = smov (!%p241_p9), 17  }
   0xe   : > { %244 = sbr.rel (%p241_p9) target bundleno = 908 (0x38c), region = 48  ;;  %s1627_s23 = smov (!%p241_p9), 111  }
   0xf   : > { %s1628_s29 = smov (!%p241_p9), 112   ;;  %s1629_s8 = smov (!%p241_p9), 95  }
  0x10   : > { %s1630_s9 = smov (!%p241_p9), 96   ;;  %s1633_s15 = smov (!%p241_p9), 110  }
  0x11   : > { %s1634_s18 = smov (!%p241_p9), 94  }
  0x13   : > { %s273_s13 = scalar_select %p272_p10, %s1697_s28, 1  ;;  %v1624_v6 = vmov 0   ;;  %v290_v7 = vlaneseq  ;;  %v1625_v17 = vmov 1966171168   ;;  %v1768_v58 = vld [vmem:[%s1947_s1] sm:$0xff]  ;;  %vm738_vm0 = vcmask 273408  }
  0x14   : > { %1533 = vset.pattern.permute.xlu0 %v1624_v6  ;;  %737 = vst [vmem:[#allocation2] sm:$0xff] %v1624_v6  ;;  %1532 = vset.pattern.permute.xlu1 %v1624_v6  ;;  %v433_v18 = vunpack.c.l.s4 %v1625_v17  ;;  %739 = vst.msk [vmem:[#allocation2 + $0x8] sm:$0xf] %vm738_vm0, %v1624_v6  ;;  %vm754_vm1 = vcmask 1043592   ;;  %vm755_vm2 = vcmask 1047556   ;;  %vm750_vm3 = vcmask 138240  }
  0x15   : > { %s1479_s14 = sshll.u32 %s273_s13, 4  ;;  %825 = vmatprep.mubr.bf16.mxu0 %v1624_v6  ;;  %875 = vmatprep.mubr.bf16.mxu1 %v1624_v6  ;;  %v1744_v8 = vshrl.u32 %v290_v7, 7  ;;  %vm758_vm4 = vcmask 134144   ;;  %vm756_vm5 = vmor %vm755_vm2, %vm754_vm1  ;;  %vm786_vm6 = vcmask 1043456   ;;  %s1631_s13 = smov 126   ;;  %vm782_vm7 = vcmask 64512  }
  0x16   : > { %s276_s17 = scalar_lea.vmem %s1946_s0, %s1479_s14  ;;  %v434_v29 = vunpack.c.0.s8 %v433_v18  ;;  %s1632_s14 = smov 127   ;;  %vm779_vm8 = vcmask 916480   ;;  %vm892_vm9 = vcmask 785408   ;;  %vm1032_vm10 = vcmask 1039360  }
  0x17   : > { %v1729_v0 = vld [vmem:[%s276_s17] sm:$0xff]  ;;  %v1731_v1 = vld [vmem:[%s276_s17 + $0x8] sm:$0xff]  ;;  %v1747_v9 = vsub.s32 1, %v1744_v8  ;;  %v300_v10 = vsub.s32 2, %v1744_v8  ;;  %v1751_v11 = vsub.s32 0, %v1744_v8  ;;  %v304_v12 = vsub.s32 3, %v1744_v8 }
  0x18   : > { %v280_v2 = vadd.f32 %v1731_v1, %v1729_v0  ;;  %v283_v3 = vmul.f32 %v1729_v0, %v1729_v0  ;;  %v284_v4 = vmul.f32 %v1731_v1, %v1731_v1  ;;  %v308_v16 = vsub.s32 4, %v1744_v8 }
  0x19   : > { %v312_v20 = vsub.s32 5, %v1744_v8  ;;  %v316_v22 = vsub.s32 6, %v1744_v8  ;;  %v320_v23 = vsub.s32 7, %v1744_v8  ;;  %v1763_v44 = vsub.s32 %v434_v29, %v1744_v8 }
  0x1a   : > { %281 = vadd.xlane.f32.xlu0 %v280_v2  ;;  %v285_v5 = vadd.f32 %v284_v4, %v283_v3  ;;  %vm973_vm11 = vcmask 908288   ;;  %vm1160_vm12 = vcmask 900096   ;;  %vm1093_vm13 = vcmask 777216  }
  0x1b   : > { %v507_v63 = vrot.slane %v1768_v58, %v1763_v44  ;;  %vm1219_vm14 = vcmask 1031168   ;;  %vm1280_vm15 = vcmask 769024  }
  0x1d   : > { %v523_v17 = vrot.slane %v507_v63, %v1763_v44 }
  0x1e   : > { %286 = vadd.xlane.f32.xlu0 %v285_v5 }
  0xa3   : > { %v282_v13 = vpop.xlane.xlu0 %281 }
  0xa4   : > { %v297_v14 = vrot.slane %v282_v13, %v1747_v9  ;;  %v301_v15 = vrot.slane %v282_v13, %v300_v10  ;;  %v293_v19 = vrot.slane %v282_v13, %v1751_v11  ;;  %v305_v24 = vrot.slane %v282_v13, %v304_v12 }
  0xa5   : > { %v309_v30 = vrot.slane %v282_v13, %v308_v16  ;;  %v313_v33 = vrot.slane %v282_v13, %v312_v20  ;;  %v317_v37 = vrot.slane %v282_v13, %v316_v22  ;;  %v321_v38 = vrot.slane %v282_v13, %v320_v23 }
  0xa6   : > { %v374_v21 = vmul.f32 0.00390625, %v301_v15  ;;  %v373_v26 = vmul.f32 0.00390625, %v297_v14  ;;  %v372_v31 = vmul.f32 0.00390625, %v293_v19  ;;  %v375_v39 = vmul.f32 0.00390625, %v305_v24 }
  0xa7   : > { %v287_v25 = vpop.xlane.xlu0 %286  ;;  %v376_v48 = vmul.f32 0.00390625, %v309_v30  ;;  %v377_v49 = vmul.f32 0.00390625, %v313_v33  ;;  %v378_v52 = vmul.f32 0.00390625, %v317_v37  ;;  %v379_v53 = vmul.f32 0.00390625, %v321_v38 }
  0xa8   : > { %v339_v27 = vrot.slane %v287_v25, %v1747_v9  ;;  %v343_v28 = vrot.slane %v287_v25, %v300_v10  ;;  %v347_v32 = vrot.slane %v287_v25, %v304_v12  ;;  %v390_v36 = vmul.f32 %v374_v21, %v374_v21 }
  0xa9   : > { %v335_v40 = vrot.slane %v287_v25, %v1751_v11  ;;  %v351_v41 = vrot.slane %v287_v25, %v308_v16  ;;  %v389_v43 = vmul.f32 %v373_v26, %v373_v26  ;;  %v388_v47 = vmul.f32 %v372_v31, %v372_v31 }
  0xaa   : > { %v381_v34 = vmul.f32 0.00390625, %v339_v27  ;;  %v382_v35 = vmul.f32 0.00390625, %v343_v28  ;;  %v383_v45 = vmul.f32 0.00390625, %v347_v32  ;;  %v391_v55 = vmul.f32 %v375_v39, %v375_v39 }
  0xab   : > { %v380_v46 = vmul.f32 0.00390625, %v335_v40  ;;  %v355_v56 = vrot.slane %v287_v25, %v312_v20  ;;  %v384_v57 = vmul.f32 0.00390625, %v351_v41  ;;  %v428_v62 = vcombine.low %v372_v31, %v373_v26 }
  0xac   : > { %v398_v42 = vsub.f32 %v382_v35, %v390_v36  ;;  %v397_v51 = vsub.f32 %v381_v34, %v389_v43  ;;  %v399_v61 = vsub.f32 %v383_v45, %v391_v55  ;;  %v392_v2 = vmul.f32 %v376_v48, %v376_v48 }
  0xad   : > { %v396_v54 = vsub.f32 %v380_v46, %v388_v47  ;;  %v429_v3 = vcombine.low %v374_v21, %v375_v39  ;;  %v430_v4 = vcombine.low %v376_v48, %v377_v49  ;;  %v431_v5 = vcombine.low %v378_v52, %v379_v53 }
  0xae   : > { %v406_v50 = vadd.f32 1e-05, %v398_v42  ;;  %v405_v60 = vadd.f32 1e-05, %v397_v51  ;;  %v438_v7 = vrot.slane %v428_v62, %v1763_v44  ;;  %v359_v8 = vrot.slane %v287_v25, %v316_v22 }
  0xaf   : > { %v404_v59 = vadd.f32 1e-05, %v396_v54  ;;  %v385_v10 = vmul.f32 0.00390625, %v355_v56  ;;  %v400_v12 = vsub.f32 %v384_v57, %v392_v2  ;;  %v445_v13 = vrot.slane %v429_v3, %v1763_v44 }
  0xb0   : > { %1538 = vrsqrt.f32 %v406_v50  ;;  %v407_v14 = vadd.f32 1e-05, %v399_v61  ;;  %v452_v15 = vrot.slane %v430_v4, %v1763_v44  ;;  %v459_v16 = vrot.slane %v431_v5, %v1763_v44 }
  0xb1   : > { %1540 = vrsqrt.f32 %v404_v59  ;;  %v393_v18 = vmul.f32 %v377_v49, %v377_v49  ;;  %v460_v19 = vcombine.low %v438_v7, %v445_v13  ;;  %v461_v20 = vcombine.high %v438_v7, %v445_v13 }
  0xb2   : > { %1542 = vrsqrt.f32 %v405_v60  ;;  %v363_v21 = vrot.slane %v287_v25, %v320_v23  ;;  %v462_v24 = vcombine.low %v452_v15, %v459_v16  ;;  %v463_v26 = vcombine.high %v452_v15, %v459_v16 }
  0xb3   : > { %v386_v27 = vmul.f32 0.00390625, %v359_v8  ;;  %v401_v22 = vsub.f32 %v385_v10, %v393_v18  ;;  %v1778_v28 = vrot.slane %v460_v19, %v1763_v44  ;;  %v1781_v29 = vrot.slane %v461_v20, %v1763_v44  ;;  %v715_v8 = vld [vmem:[%s1948_s2] sm:$0xff] }
  0xb4   : > { %1544 = vrsqrt.f32 %v407_v14  ;;  %v408_v30 = vadd.f32 1e-05, %v400_v12  ;;  %v1784_v31 = vrot.slane %v462_v24, %v1763_v44  ;;  %v1787_v32 = vrot.slane %v463_v26, %v1763_v44 }
  0xb5   : > { %v545_v33 = vcombine.high %v523_v17, %v523_v17  ;;  %v394_v23 = vmul.f32 %v378_v52, %v378_v52  ;;  %v515_v35 = vcombine.high %v507_v63, %v507_v63  ;;  %v387_v37 = vmul.f32 0.00390625, %v363_v21 }
  0xb6   : > { %v492_v25 = vcombine.low %v1778_v28, %v1784_v31  ;;  %v493_v34 = vcombine.low %v1781_v29, %v1787_v32  ;;  %1546 = vrsqrt.f32 %v408_v30  ;;  %v409_v38 = vadd.f32 1e-05, %v401_v22 }
  0xb7   : > { %v402_v39 = vsub.f32 %v386_v27, %v394_v23  ;;  %v395_v41 = vmul.f32 %v379_v53, %v379_v53  ;;  %v537_v43 = vrot.slane %v515_v35, %v1763_v44  ;;  %v500_v49 = vcombine.high %v1768_v58, %v1768_v58 }
  0xb8   : > { %1548 = vrsqrt.f32 %v409_v38 }
  0xb9   : > { %v410_v46 = vadd.f32 1e-05, %v402_v39  ;;  %v403_v47 = vsub.f32 %v387_v37, %v395_v41  ;;  %v547_v51 = vcombine.high %v537_v43, %v537_v43  ;;  %v514_v53 = vrot.slane %v500_v49, %v1763_v44 }
  0xbb   : > { %1550 = vrsqrt.f32 %v410_v46  ;;  %v411_v52 = vadd.f32 1e-05, %v403_v47  ;;  %v530_v57 = vrot.slane %v514_v53, %v1763_v44  ;;  %v516_v59 = vcombine.high %v514_v53, %v514_v53 }
  0xbd   : > { %v1539_v36 = vpop.eup %1538  ;;  %1552 = vrsqrt.f32 %v411_v52  ;;  %v544_v58 = vrot.slane %v516_v59, %v1763_v44  ;;  %v546_v63 = vcombine.high %v530_v57, %v530_v57 }
  0xbe   : > { %v559_v40 = vmul.f32 %v1539_v36, %v545_v33  ;;  %v1541_v42 = vpop.eup %1540 }
  0xbf   : > { %v557_v45 = vmul.f32 %v1541_v42, %v523_v17  ;;  %v1543_v48 = vpop.eup %1542  ;;  %v548_v4 = vcombine.high %v544_v58, %v544_v58 }
  0xc0   : > { %585 = vperm.xlu0 %1533, %v559_v40   ;;  %v558_v50 = vmul.f32 %v1543_v48, %v537_v43 }
  0xc1   : > { %567 = vperm.xlu1 %1532, %v557_v45   ;;  %v1545_v54 = vpop.eup %1544 }
  0xc2   : > { %v560_v55 = vmul.f32 %v1545_v54, %v547_v51  ;;  %v497_v51 = vsub.f32 %v1731_v1, %v493_v34 }
  0xc3   : > { %v1547_v56 = vpop.eup %1546 }
  0xc4   : > { %v561_v60 = vmul.f32 %v1547_v56, %v530_v57 }
  0xc5   : > { %576 = vperm.xlu1 %1532, %v558_v50   ;;  %v1549_v61 = vpop.eup %1548  ;;  %v496_v50 = vsub.f32 %v1729_v0, %v492_v25 }
  0xc6   : > { %v562_v62 = vmul.f32 %v1549_v61, %v544_v58 }
  0xc8   : > { %v1551_v2 = vpop.eup %1550 }
  0xc9   : > { %594 = vperm.xlu1 %1532, %v560_v55   ;;  %v563_v3 = vmul.f32 %v1551_v2, %v546_v63 }
  0xca   : > { %v1553_v5 = vpop.eup %1552 }
  0xcb   : > { %v564_v7 = vmul.f32 %v1553_v5, %v548_v4 }
  0xcd   : > { %603 = vperm.xlu1 %1532, %v561_v60  }
  0xd1   : > { %612 = vperm.xlu1 %1532, %v562_v62  }
  0xd5   : > { %621 = vperm.xlu1 %1532, %v563_v3  }
  0xd9   : > { %630 = vperm.xlu1 %1532, %v564_v7  }
  0xdd   : > { %718 = vperm.xlu1 %1532, %v715_v8   ;;  %v761_v8 = vld [vmem:[%s1949_s3] sm:$0xf] }
 0x13b   : > { %v586_v15 = vpop.permute.xlu0 %585 }
 0x13c   : > { %v568_v10 = vpop.permute.xlu1 %567  ;;  %v591_v18 = vrot.slane %v586_v15, %v1751_v11 }
 0x13d   : > { %v573_v21 = vrot.slane %v568_v10, %v1751_v11  ;;  %v1351_v10 = vld [vmem:[%s1950_s4] sm:$0xff] }
 0x140   : > { %v577_v12 = vpop.permute.xlu1 %576 }
 0x141   : > { %v582_v19 = vrot.slane %v577_v12, %v1751_v11 }
 0x143   : > { %v645_v27 = vcombine.low %v573_v21, %v582_v19 }
 0x144   : > { %v595_v13 = vpop.permute.xlu1 %594 }
 0x145   : > { %v600_v17 = vrot.slane %v595_v13, %v1751_v11  ;;  %v655_v37 = vrot.slane %v645_v27, %v1763_v44 }
 0x147   : > { %v646_v24 = vcombine.low %v591_v18, %v600_v17 }
 0x148   : > { %v604_v14 = vpop.permute.xlu1 %603 }
 0x149   : > { %v609_v22 = vrot.slane %v604_v14, %v1751_v11  ;;  %v662_v33 = vrot.slane %v646_v24, %v1763_v44 }
 0x14b   : > { %v677_v39 = vcombine.low %v655_v37, %v662_v33  ;;  %v678_v40 = vcombine.high %v655_v37, %v662_v33 }
 0x14c   : > { %v613_v16 = vpop.permute.xlu1 %612 }
 0x14d   : > { %v618_v26 = vrot.slane %v613_v16, %v1751_v11  ;;  %v687_v46 = vrot.slane %v677_v39, %v1763_v44  ;;  %v694_v47 = vrot.slane %v678_v40, %v1763_v44 }
 0x14f   : > { %v647_v23 = vcombine.low %v609_v22, %v618_v26 }
 0x150   : > { %v622_v20 = vpop.permute.xlu1 %621 }
 0x151   : > { %v627_v35 = vrot.slane %v622_v20, %v1751_v11  ;;  %v669_v41 = vrot.slane %v647_v23, %v1763_v44  ;;  %v1445_v23 = vld [vmem:[%s1949_s3 + $0xc] sm:$0xf] }
 0x154   : > { %v631_v30 = vpop.permute.xlu1 %630 }
 0x155   : > { %v636_v36 = vrot.slane %v631_v30, %v1751_v11 }
 0x157   : > { %v648_v38 = vcombine.low %v627_v35, %v636_v36 }
 0x158   : > { %v719_v56 = vpop.permute.xlu1 %718 }
 0x159   : > { %v676_v42 = vrot.slane %v648_v38, %v1763_v44 }
 0x15b   : > { %v679_v43 = vcombine.low %v669_v41, %v676_v42  ;;  %v680_v45 = vcombine.high %v669_v41, %v676_v42 }
 0x15d   : > { %v701_v48 = vrot.slane %v679_v43, %v1763_v44  ;;  %v708_v49 = vrot.slane %v680_v45, %v1763_v44  ;;  %v1453_v45 = vld [vmem:[%s1949_s3 + $0x18] sm:$0xf] }
 0x15f   : > { %v709_v52 = vcombine.low %v687_v46, %v701_v48  ;;  %v710_v54 = vcombine.low %v694_v47, %v708_v49  ;;  %v1457_v46 = vld [vmem:[%s1949_s3 + $0x10] sm:$0xf] }
 0x161   : > { %v713_v53 = vmul.f32 %v709_v52, %v496_v50  ;;  %v714_v55 = vmul.f32 %v710_v54, %v497_v51 }
 0x163   : > { %v721_v57 = vadd.f32 %v719_v56, %v713_v53  ;;  %v722_v59 = vadd.f32 %v719_v56, %v714_v55  ;;  %v1456_v56 = vld [vmem:[%s1949_s3 + $0x4] sm:$0xf] }
 0x165   : > { %v1442_v60 = vmul.f32 -1.442695, %v721_v57  ;;  %v1443_v61 = vmul.f32 -1.442695, %v722_v59 }
 0x167   : > { %1554 = vpow2.f32 %v1442_v60 }
 0x168   : > { %1556 = vpow2.f32 %v1443_v61 }
 0x174   : > { %v1555_v44 = vpop.eup %1554 }
 0x175   : > { %v1557_v28 = vpop.eup %1556  ;;  %v729_v31 = vadd.f32 1.0, %v1555_v44 }
 0x176   : > { %v730_v0 = vadd.f32 1.0, %v1557_v28 }
 0x177   : > { %1558 = vrcp.f32 %v729_v31 }
 0x178   : > { %1560 = vrcp.f32 %v730_v0 }
 0x184   : > { %v1559_v29 = vpop.eup %1558 }
 0x185   : > { %v1561_v32 = vpop.eup %1560  ;;  %v735_v1 = vmul.f32 %v1559_v29, %v721_v57  ;;  %v1462_v57 = vld [vmem:[%s1949_s3 + $0x1c] sm:$0xf] }
 0x186   : > { %v736_v25 = vmul.f32 %v1561_v32, %v722_v59  ;;  %v1466_v32 = vld [vmem:[%s1949_s3 + $0x14] sm:$0xf] }
 0x188   : > { %v1480_v34 = vpack.c.bf16 %v736_v25, %v735_v1  ;;  %v1465_v1 = vld [vmem:[%s1949_s3 + $0x8] sm:$0xf] }
 0x18a   : > { %747 = vrot.lane.b32.xlu1 %v1480_v34, %s1626_s22 }
 0x1fc   : > { %v748_v58 = vpop.permute.xlu1 %747 }
 0x1fd   : > { %v749_v62 = vrot.slane %v748_v58, 4 }
 0x1ff   : > { %v751_v63 = vsel %vm750_vm3, %v749_v62, %v748_v58  ;;  %759 = vst.msk [vmem:[#allocation2 + $0x8] sm:$0xf] %vm758_vm4, %v749_v62 }
 0x200   : > { %757 = vst.msk [vmem:[#allocation2] sm:$0xff] %vm756_vm5, %v751_v63 }
 0x206   : > { %v1537_v2 = vld [vmem:[#allocation2 + $0x8] ss:$0 sps:$4 sm:$0xff]  }
 0x207   : > { %v760_v3 = vld [vmem:[#allocation2] sm:$0xff]  ;;  %971 = vrot.lane.b32.xlu0 %v1537_v2, %s1627_s23  ;;  %777 = vrot.lane.b32.xlu1 %v1537_v2, %s1628_s29 }
 0x208   : > { %v1446_v4 = vcombine.low %v760_v3, %v760_v3  ;;  %v1447_v5 = vcombine.high %v760_v3, %v760_v3  ;;  %v1471_v3 = vld [vmem:[%s1949_s3 + $0x20] sm:$0xf] }
 0x20a   : > { %1451 = vmatprep.subr.msk.bf16.mxu1 %vm786_vm6, %v1447_v5  ;;  %v838_v7 = vsel %vm786_vm6, %v1446_v4, 0 }
 0x20b   : > { %858 = vmatpush1.bf16.msra.mxu1 %v838_v7  ;;  %1091 = vrot.lane.b32.xlu0 %v1537_v2, %s1629_s8 }
 0x20c   : > { %890 = vrot.lane.b32.xlu1 %v1537_v2, %s1630_s9 }
 0x20e   : > { %1452 = vmatmul.mubr.msk.bf16.vlgmr.msra.gmra.mxu1 %vm782_vm7, %v761_v8 }
 0x20f   : > { %1217 = vrot.lane.b32.xlu0 %v1537_v2, %s1631_s13  ;;  %1017 = vmatprep.mubr.bf16.mxu1 %v1624_v6 }
 0x210   : > { %1030 = vrot.lane.b32.xlu1 %v1537_v2, %s1632_s14 }
 0x213   : > { %888 = vrot.lane.b32.xlu0 %v1447_v5, %s1630_s9 }
 0x214   : > { %1158 = vrot.lane.b32.xlu1 %v1537_v2, %s1633_s15 }
 0x217   : > { %967 = vrot.lane.b32.xlu0 %v1446_v4, %s1627_s23 }
 0x218   : > { %773 = vrot.lane.b32.xlu1 %v1446_v4, %s1628_s29 }
 0x21b   : > { %1028 = vrot.lane.b32.xlu0 %v1447_v5, %s1632_s14 }
 0x21c   : > { %775 = vrot.lane.b32.xlu1 %v1447_v5, %s1628_s29 }
 0x21f   : > { %1087 = vrot.lane.b32.xlu0 %v1446_v4, %s1629_s8 }
 0x220   : > { %886 = vrot.lane.b32.xlu1 %v1446_v4, %s1630_s9 }
 0x223   : > { %1156 = vrot.lane.b32.xlu0 %v1447_v5, %s1633_s15 }
 0x224   : > { %969 = vrot.lane.b32.xlu1 %v1447_v5, %s1627_s23 }
 0x227   : > { %1213 = vrot.lane.b32.xlu0 %v1446_v4, %s1631_s13 }
 0x228   : > { %1026 = vrot.lane.b32.xlu1 %v1446_v4, %s1632_s14 }
 0x22b   : > { %1276 = vrot.lane.b32.xlu0 %v1447_v5, %s1634_s18 }
 0x22c   : > { %1089 = vrot.lane.b32.xlu1 %v1447_v5, %s1629_s8 }
 0x22f   : > { %1354 = vperm.xlu0 %1533, %v1351_v10  }
 0x230   : > { %1154 = vrot.lane.b32.xlu1 %v1446_v4, %s1633_s15  ;;  %s1481_s15 = sshll.u32 %s1697_s28, 8  ;;  %s1635_s28 = smov [#allocation3]  }
 0x231   : > { %s1374_s20 = scalar_lea.hbm %s1953_s7, %s1481_s15  ;;  %s1566_s23 = sshll.u32 %s1635_s28, 4  ;;  %s1567_s23 = int_to_ptr.vmem [resolvable:$false] %s1566_s23 }
 0x232   : > { %s1568_s29 = scalar_lea.vmem %s1567_s23, 512 }
 0x234   : > { %1215 = vrot.lane.b32.xlu1 %v1447_v5, %s1631_s13  ;;  %s269_s13 = sand.u32 1, %s1614_s25  }
 0x235   : > { %s1439_s14 = sshll.u32 %s269_s13, 4  ;;  %s1362_s21 = scalar_lea.sflag [#allocation4], %s269_s13 }
 0x236   : > { %s271_s16 = scalar_lea.vmem [#allocation3], %s1439_s14 }
 0x237   : > { %s1376_s17 = sshll.u32 %s271_s16, 4  ;;  %s1377_s17 = int_to_ptr.vmem [resolvable:$true] %s1376_s17 }
 0x238   : > { %1274 = vrot.lane.b32.xlu1 %v1446_v4, %s1634_s18  ;;  %s1562_s22 = scalar_lea.vmem %s1377_s17, 256  ;;  %p1569_p0 = scmp.lt.s32.totalorder %s1377_s17, %s1567_s23 }
 0x239   : > { %p1563_p11 = scmp.ne.s32.totalorder %s1377_s17, %s1562_s22  ;;  %p1570_p1 = scmp.lt.s32.totalorder %s1568_s29, %s1562_s22 }
 0x23b   : > { %p1564_p12 = pnand %p1563_p11, %p1714_p5  ;;  %p1571_p2 = por %p1570_p1, %p1569_p0 }
 0x23c   : > { %1278 = vrot.lane.b32.xlu1 %v1537_v2, %s1634_s18 }
 0x23d   : > { %p1565_p13 = pneg %p1564_p12 }
 0x23f   : > { %p1572_p3 = pnand %p1571_p2, %p1565_p13 }
 0x279   : > { %v972_v12 = vpop.permute.xlu0 %971  ;;  %v778_v13 = vpop.permute.xlu1 %777 }
 0x27d   : > { %v1092_v14 = vpop.permute.xlu0 %1091 }
 0x27e   : > { %v891_v15 = vpop.permute.xlu1 %890 }
 0x281   : > { %v1837_v16 = vpop.permute.xlu0 %1217 }
 0x282   : > { %v1031_v17 = vpop.permute.xlu1 %1030 }
 0x285   : > { %v889_v19 = vpop.permute.xlu0 %888 }
 0x286   : > { %v1159_v18 = vpop.permute.xlu1 %1158  ;;  %v894_v33 = vsel %vm892_vm9, %v889_v19, %v891_v15 }
 0x289   : > { %v968_v20 = vpop.permute.xlu0 %967 }
 0x28a   : > { %v774_v21 = vpop.permute.xlu1 %773 }
 0x28d   : > { %v1029_v24 = vpop.permute.xlu0 %1028 }
 0x28e   : > { %v776_v26 = vpop.permute.xlu1 %775  ;;  %v1034_v39 = vsel %vm1032_vm10, %v1029_v24, %v1031_v17 }
 0x28f   : > { %v781_v27 = vsel %vm779_vm8, %v776_v26, %v778_v13  ;;  %v780_v22 = vsel %vm779_vm8, %v774_v21, %v776_v26 }
 0x290   : > { %1449 = vmatprep.subr.msk.bf16.mxu0 %vm786_vm6, %v781_v27  ;;  %v788_v30 = vsel %vm786_vm6, %v780_v22, 0 }
 0x291   : > { %808 = vmatpush1.bf16.msra.mxu0 %v788_v30  ;;  %v1088_v37 = vpop.permute.xlu0 %1087 }
 0x292   : > { %1454 = vmatprep.subr.msk.bf16.mxu0 %vm786_vm6, %v894_v33  ;;  %v887_v35 = vpop.permute.xlu1 %886 }
 0x293   : > { %v893_v36 = vsel %vm892_vm9, %v887_v35, %v889_v19 }
 0x294   : > { %v899_v38 = vsel %vm786_vm6, %v893_v36, 0  ;;  %1450 = vmatmul.mubr.msk.bf16.vlgmr.msra.gmra.mxu0 %vm782_vm7, %v1445_v23 }
 0x295   : > { %919 = vmatpush1.bf16.msra.mxu0 %v899_v38  ;;  %936 = vmatprep.mubr.bf16.mxu0 %v1624_v6  ;;  %v1157_v47 = vpop.permute.xlu0 %1156  ;;  %v947_v38 = vld [vmem:[%s1951_s5] sm:$0x3] }
 0x296   : > { %1460 = vmatprep.subr.msk.bf16.mxu0 %vm786_vm6, %v1034_v39  ;;  %v970_v40 = vpop.permute.xlu1 %969  ;;  %v1162_v51 = vsel %vm1160_vm12, %v1157_v47, %v1159_v18 }
 0x297   : > { %v974_v41 = vsel %vm973_vm11, %v968_v20, %v970_v40  ;;  %v975_v42 = vsel %vm973_vm11, %v970_v40, %v972_v12 }
 0x298   : > { %v980_v43 = vsel %vm786_vm6, %v974_v41, 0  ;;  %1458 = vmatprep.subr.msk.bf16.mxu1 %vm786_vm6, %v975_v42 }
 0x299   : > { %1000 = vmatpush1.bf16.msra.mxu1 %v980_v43  ;;  %v1214_v44 = vpop.permute.xlu0 %1213 }
 0x29a   : > { %v1027_v48 = vpop.permute.xlu1 %1026 }
 0x29b   : > { %v1033_v49 = vsel %vm1032_vm10, %v1027_v48, %v1029_v24 }
 0x29c   : > { %v1039_v50 = vsel %vm786_vm6, %v1033_v49, 0  ;;  %1455 = vmatmul.mubr.msk.bf16.vlgmr.msra.gmra.mxu0 %vm782_vm7, %v1453_v45  ;;  %1459 = vmatmul.mubr.msk.bf16.vlgmr.msra.gmra.mxu1 %vm782_vm7, %v1457_v46  ;;  %v1335_v45 = vld [vmem:[%s1952_s6] sm:$0x3]  ;;  %v952_v49 = vrot.slane %v947_v38, %v1751_v11 }
 0x29d   : > { %1059 = vmatpush1.bf16.msra.mxu0 %v1039_v50  ;;  %1076 = vmatprep.mubr.bf16.mxu0 %v1624_v6  ;;  %v1277_v34 = vpop.permute.xlu0 %1276 }
 0x29e   : > { %1467 = vmatprep.subr.msk.bf16.mxu0 %vm786_vm6, %v1162_v51  ;;  %v1090_v52 = vpop.permute.xlu1 %1089  ;;  %1137 = vmatprep.mubr.bf16.mxu1 %v1624_v6  ;;  %v956_v51 = vrot.slane %v947_v38, %v1747_v9 }
 0x29f   : > { %v1094_v54 = vsel %vm1093_vm13, %v1088_v37, %v1090_v52  ;;  %v1095_v53 = vsel %vm1093_vm13, %v1090_v52, %v1092_v14 }
 0x2a0   : > { %v1100_v55 = vsel %vm786_vm6, %v1094_v54, 0  ;;  %1463 = vmatprep.subr.msk.bf16.mxu1 %vm786_vm6, %v1095_v53 }
 0x2a1   : > { %1120 = vmatpush1.bf16.msra.mxu1 %v1100_v55 }
 0x2a2   : > { %v1155_v59 = vpop.permute.xlu1 %1154 }
 0x2a3   : > { %v1161_v60 = vsel %vm1160_vm12, %v1155_v59, %v1157_v47 }
 0x2a4   : > { %v1167_v61 = vsel %vm786_vm6, %v1161_v60, 0  ;;  %1461 = vmatmul.mubr.msk.bf16.vlgmr.msra.gmra.mxu0 %vm782_vm7, %v1456_v56  ;;  %1464 = vmatmul.mubr.msk.bf16.vlgmr.msra.gmra.mxu1 %vm782_vm7, %v1462_v57  ;;  %v1340_v57 = vrot.slane %v1335_v45, %v1751_v11  ;;  %v1344_v60 = vrot.slane %v1335_v45, %v1747_v9 }
 0x2a5   : > { %1187 = vmatpush1.bf16.msra.mxu0 %v1167_v61  ;;  %1204 = vmatprep.mubr.bf16.mxu0 %v1624_v6 }
 0x2a6   : > { %v1216_v28 = vpop.permute.xlu1 %1215  ;;  %1263 = vmatprep.mubr.bf16.mxu1 %v1624_v6 }
 0x2a7   : > { %v1220_v31 = vsel %vm1219_vm14, %v1214_v44, %v1216_v28  ;;  %v1221_v0 = vsel %vm1219_vm14, %v1216_v28, %v1837_v16 }
 0x2a8   : > { %v1226_v29 = vsel %vm786_vm6, %v1220_v31, 0  ;;  %1469 = vmatprep.subr.msk.bf16.mxu1 %vm786_vm6, %v1221_v0 }
 0x2a9   : > { %1246 = vmatpush1.bf16.msra.mxu1 %v1226_v29 }
 0x2aa   : > { %v1275_v25 = vpop.permute.xlu1 %1274 }
 0x2ab   : > { %v1281_v58 = vsel %vm1280_vm15, %v1275_v25, %v1277_v34 }
 0x2ac   : > { %1468 = vmatmul.mubr.msk.bf16.vlgmr.msra.gmra.mxu0 %vm782_vm7, %v1466_v32  ;;  %1470 = vmatmul.mubr.msk.bf16.vlgmr.msra.gmra.mxu1 %vm782_vm7, %v1465_v1  ;;  %v1287_v2 = vsel %vm786_vm6, %v1281_v58, 0 }
 0x2ad   : > { %1324 = vmatprep.mubr.bf16.mxu0 %v1624_v6 }
 0x2ae   : > { %v1279_v62 = vpop.permute.xlu1 %1278 }
 0x2af   : > { %v1282_v63 = vsel %vm1280_vm15, %v1277_v34, %v1279_v62 }
 0x2b0   : > { %1472 = vmatprep.subr.msk.bf16.mxu0 %vm786_vm6, %v1282_v63  ;;  %v1355_v63 = vpop.permute.xlu0 %1354 }
 0x2b1   : > { %1307 = vmatpush1.bf16.msra.mxu0 %v1287_v2 }
 0x2b4   : > { %1473 = vmatmul.mubr.msk.bf16.vlgmr.msra.gmra.mxu0 %vm782_vm7, %v1471_v3 }
 0x2ce   : > { %v877_v4 = vpop.f32.mrf.mxu1 }
 0x2d0   : > { %v879_v5 = vpop.f32.mrf.mxu1 }
 0x2d2   : > { %v881_v7 = vpop.f32.mrf.mxu1 }
 0x2d4   : > { %v882_v8 = vpop.f32.mrf.mxu1 }
 0x354   : > { %v827_v10 = vpop.f32.mrf.mxu0 }
 0x355   : > { %v878_v41 = vadd.f32 %v877_v4, %v827_v10 }
 0x356   : > { %v829_v12 = vpop.f32.mrf.mxu0 }
 0x357   : > { %v880_v47 = vadd.f32 %v879_v5, %v829_v12 }
 0x358   : > { %v831_v6 = vpop.f32.mrf.mxu0 }
 0x35a   : > { %v832_v13 = vpop.f32.mrf.mxu0 }
 0x35c   : > { %v938_v14 = vpop.f32.mrf.mxu0  ;;  %v1019_v15 = vpop.f32.mrf.mxu1 }
 0x35d   : > { %v945_v48 = vadd.f32 %v938_v14, %v878_v41 }
 0x35e   : > { %v940_v16 = vpop.f32.mrf.mxu0  ;;  %v1021_v17 = vpop.f32.mrf.mxu1 }
 0x35f   : > { %v946_v53 = vadd.f32 %v940_v16, %v880_v47  ;;  %v959_v61 = vmul.f32 %v952_v49, %v945_v48 }
 0x360   : > { %v942_v18 = vpop.f32.mrf.mxu0  ;;  %v1023_v19 = vpop.f32.mrf.mxu1 }
 0x361   : > { %v960_v29 = vmul.f32 %v956_v51, %v946_v53 }
 0x362   : > { %v943_v20 = vpop.f32.mrf.mxu0  ;;  %v1024_v21 = vpop.f32.mrf.mxu1 }
 0x364   : > { %v1078_v24 = vpop.f32.mrf.mxu0  ;;  %v1139_v26 = vpop.f32.mrf.mxu1 }
 0x365   : > { %v1079_v42 = vadd.f32 %v1078_v24, %v1019_v15 }
 0x366   : > { %v1080_v27 = vpop.f32.mrf.mxu0  ;;  %v1141_v22 = vpop.f32.mrf.mxu1 }
 0x367   : > { %v1081_v50 = vadd.f32 %v1080_v27, %v1021_v17  ;;  %v1146_v55 = vadd.f32 %v1139_v26, %v1079_v42 }
 0x368   : > { %v1082_v30 = vpop.f32.mrf.mxu0  ;;  %v1143_v33 = vpop.f32.mrf.mxu1 }
 0x369   : > { %v1147_v44 = vadd.f32 %v1141_v22, %v1081_v50  ;;  %v1148_v32 = vadd.f32 %v1146_v55, %v959_v61 }
 0x36a   : > { %v1083_v23 = vpop.f32.mrf.mxu0  ;;  %v1144_v35 = vpop.f32.mrf.mxu1 }
 0x36b   : > { %v1149_v58 = vadd.f32 %v1147_v44, %v960_v29 }
 0x36c   : > { %v1206_v36 = vpop.f32.mrf.mxu0  ;;  %v1265_v37 = vpop.f32.mrf.mxu1 }
 0x36d   : > { %v1266_v56 = vadd.f32 %v1265_v37, %v1206_v36 }
 0x36e   : > { %v1208_v39 = vpop.f32.mrf.mxu0  ;;  %v1267_v40 = vpop.f32.mrf.mxu1 }
 0x36f   : > { %v1268_v28 = vadd.f32 %v1267_v40, %v1208_v39 }
 0x370   : > { %v1210_v43 = vpop.f32.mrf.mxu0  ;;  %v1269_v46 = vpop.f32.mrf.mxu1 }
 0x372   : > { %v1211_v52 = vpop.f32.mrf.mxu0  ;;  %v1270_v54 = vpop.f32.mrf.mxu1 }
 0x374   : > { %v1326_v59 = vpop.f32.mrf.mxu0 }
 0x375   : > { %v1333_v31 = vadd.f32 %v1326_v59, %v1266_v56 }
 0x376   : > { %v1328_v0 = vpop.f32.mrf.mxu0 }
 0x377   : > { %v1347_v1 = vmul.f32 %v1340_v57, %v1333_v31  ;;  %v1334_v25 = vadd.f32 %v1328_v0, %v1268_v28 }
 0x378   : > { %v1330_v34 = vpop.f32.mrf.mxu0 }
 0x379   : > { %v1349_v62 = vadd.f32 %v1347_v1, %v1148_v32  ;;  %v1348_v11 = vmul.f32 %v1344_v60, %v1334_v25 }
 0x37a   : > { %v1331_v9 = vpop.f32.mrf.mxu0 }
 0x37b   : > { %v1357_v2 = vadd.f32 %v1355_v63, %v1349_v62  ;;  %v1350_v3 = vadd.f32 %v1348_v11, %v1149_v58 }
 0x37d   : > { %v1358_v4 = vadd.f32 %v1355_v63, %v1350_v3  ;;  %1359 = vst [vmem:[%s271_s16] sm:$0xff] %v1357_v2 }
 0x37f   : > { %1360 = vst [vmem:[%s271_s16 + $0x8] sm:$0xff] %v1358_v4 }
 0x380   : > { %1575 = shalt.err (!%p1572_p3)
}
 0x381   : > { %s1576_s8 = scalar_lea.hbm %s1374_s20, 256  ;;  %s1580_s14 = scalar_lea.hbm %s1953_s7, 512 }
 0x382   : > { %p1577_p4 = scmp.ne.s32.totalorder %s1374_s20, %s1576_s8  ;;  %p1581_p9 = scmp.lt.s32.totalorder %s1374_s20, %s1953_s7 }
 0x383   : > { %p1582_p10 = scmp.lt.s32.totalorder %s1580_s14, %s1576_s8 }
 0x384   : > { %p1578_p7 = pnand %p1577_p4, %p1714_p5 }
 0x385   : > { %p1583_p11 = por %p1582_p10, %p1581_p9 }
 0x386   : > { %p1579_p8 = pneg %p1578_p7 }
 0x388   : > { %p1584_p12 = pnand %p1583_p11, %p1579_p8 }
 0x38a   : > { %1587 = shalt.err (!%p1584_p12)
}
 0x38b   : > { %1482 = dma.vmem_to_hbm [thread:$0]  (%p1714_p5), %s1377_s17, 256, %s1374_s20, %s1362_s21  }
 0x38c PF: > { %p1488_p13 = scmp.ge.s32.totalorder %s1622_s27, 2  ;;  %s1388_s18 = sand.u32 1, %s1610_s24  }
 0x38d   : > { %s1389_s19 = scalar_lea.sflag [#allocation4], %s1388_s18 }
 0x38e   : > { %p1485_p0 = pnand %p1488_p13, %p1718_p6 }
 0x390   : > { %p1486_p1 = pneg %p1485_p0 }
 0x392   : > { %1605 = dma.done.wait (%p1486_p1), %s1389_s19, 256  }
 0x393   : > { %1607 = vsyncadd (%p1486_p1), %s1389_s19, 4294967040  ;;  %p17_p2 = scmp.ge.s32.totalorder %s1701_s30, 4   ;;  %s1956_s24 = smov %s1614_s25 }
 0x394   : > { %s1957_s25 = smov %s1618_s26  ;;  %s1958_s26 = smov %s1712_s10 }
 0x395   : > { %s1959_s27 = smov %s1701_s30  ;;  %19 = sbr.rel (!%p17_p2) target bundleno = 3 (0x3), region = 91 }
 0x39a   :  { %1394 = vsyncpa [#allocation4], 1 }
 0x39b   :  { %1396 = vsyncpa [#allocation4 + $0x1], 1 }

</bundles_post_ra>
